<compile_context>
chip_gen: v7x
topology: tpu7x:2x2x1
jax: 0.10.0
libtpu: 0.0.40
codegen_flags: <defaults>
</compile_context>

<pallas_src>
import jax
import jax.numpy as jnp
from jax.experimental import pallas as pl
from jax.experimental.pallas import tpu as pltpu


def _round_up(a, b):
    return (a + b - 1) // b * b


def _vmem_capacity_bytes():
    """Physical VMEM per TensorCore (used for generation-aware tiling/limits)."""
    try:
        return int(pltpu.get_tpu_info().vmem_capacity_bytes)
    except Exception:
        return 64 << 20  # conservative fallback (v7x per-TC VMEM)


def _cbm_kernel(x_ref, w_ref, b_ref, o_ref):
    # x_ref: (1, R, D_p)       bf16  im2col rows, R = block_h * Wo
    # w_ref: (D_p, block_c)    bf16  conv weights with BN scale folded in
    # b_ref: (1, block_c)      f32   folded BN bias
    # o_ref: (1, R, block_c)   bf16  lane-dense output tile (block_c % 128 == 0)
    #
    # Single deep MXU matmul (contraction depth D_p = K*K*Cin_p); the result is
    # kept in registers (no VMEM scratch round-trip) and fed to the epilogue.
    y = jnp.dot(x_ref[0], w_ref[...], preferred_element_type=jnp.float32)
    y = y + b_ref[...]                                  # folded BN bias

    # Mish: y * tanh(softplus(y)); tanh(log(1+t)) = ((1+t)^2 - 1)/((1+t)^2 + 1)
    # with t = e^y -> 1 EUP exp + 1 EUP approx reciprocal (+ 1 Newton step).
    t = jnp.exp(jnp.minimum(y, 20.0))                   # clamp avoids overflow
    u = (1.0 + t) * (1.0 + t)
    d = u + 1.0
    r = pl.reciprocal(d, approx=True)
    r = r * (2.0 - d * r)                               # Newton step -> ~f32 exact
    o_ref[0] = (y * ((u - 1.0) * r)).astype(o_ref.dtype)


def cbm_block(x_nchw, weight_oihw, gamma, beta, running_mean, running_var,
              *, stride=1, eps=1e-5, block_h=None):
    """CBMBlock forward: (N, Cin, H, W) -> (N, Cout, Ho, Wo), bfloat16 output."""
    N, Cin, H, W = x_nchw.shape
    Cout, Cin_w, K, K2 = weight_oihw.shape
    assert Cin == Cin_w and K == K2
    pad = K // 2
    Ho = (H + 2 * pad - K) // stride + 1
    Wo = (W + 2 * pad - K) // stride + 1

    Cin_p = _round_up(Cin, 8)                 # sublane-friendly channel pad
    Cout_p = _round_up(Cout, 128)             # lane-dense output
    D = K * K * Cin_p                         # fused im2col contraction depth
    D_p = _round_up(D, 16)                    # bf16 sublane packing (weights)

    # ---- Cout tiling: keep the (double-buffered) weight block bounded ----
    if D_p * Cout_p * 2 > (4 << 20):
        block_c = 128 * max(1, (4 << 20) // (D_p * 128 * 2))
        block_c = min(block_c, Cout_p)
        while Cout_p % block_c != 0:
            block_c -= 128
    else:
        block_c = Cout_p
    n_c = Cout_p // block_c

    # ---- generation-aware row tiling ----
    vmem_cap = _vmem_capacity_bytes()
    target_bytes = max(2 << 20, min(16 << 20, vmem_cap // 8))
    # keep enough grid steps for 2-TensorCore (v7x) megacore sharding
    min_h_tiles = max(1, 8 // max(1, N * n_c))
    block_h_cap = max(8, _round_up(pl.cdiv(Ho, min_h_tiles), 8))
    if block_h is None:
        bytes_per_row = Wo * (D_p + block_c) * 2        # bf16 in + bf16 out
        block_h = max(8, target_bytes // max(bytes_per_row, 1))
        block_h = min(block_h, block_h_cap)
    block_h = _round_up(min(int(block_h), _round_up(Ho, 8)), 8)
    if (block_h * Wo) % 16 != 0:                        # keep R 16-aligned
        block_h = _round_up(block_h, 16)
    R = block_h * Wo
    Ho_p = _round_up(Ho, block_h)
    n_h = Ho_p // block_h

    # ---- parameter folding (BN eval mode), all in the wrapper ----
    scale = (gamma / jnp.sqrt(running_var + eps)).astype(jnp.float32)   # (Cout,)
    bias = (beta - running_mean * scale).astype(jnp.float32)            # (Cout,)
    w_hwio = jnp.transpose(weight_oihw, (2, 3, 1, 0)).astype(jnp.float32)
    w_hwio = w_hwio * scale[None, None, None, :]        # fold BN scale into W
    w_hwio = jnp.pad(w_hwio, ((0, 0), (0, 0), (0, Cin_p - Cin), (0, Cout_p - Cout)))
    w_flat = w_hwio.reshape(K * K * Cin_p, Cout_p)
    w_flat = jnp.pad(w_flat, ((0, D_p - D), (0, 0))).astype(jnp.bfloat16)
    bias_p = jnp.pad(bias, (0, Cout_p - Cout)).reshape(1, Cout_p)

    # ---- activation glue (all bf16): NHWC, pads, full im2col rows ----
    x = jnp.transpose(x_nchw.astype(jnp.bfloat16), (0, 2, 3, 1))        # (N,H,W,Cin)
    x = jnp.pad(x, ((0, 0), (pad, pad), (pad, pad), (0, Cin_p - Cin)))
    # x_cols[n, ho, wo, (kh*K+kw)*Cin_p + c] = x_pad[n, ho*stride+kh, wo*stride+kw, c]
    cols = []
    for kh in range(K):
        for kw in range(K):
            cols.append(x[:, kh:kh + stride * (Ho - 1) + 1:stride,
                            kw:kw + stride * (Wo - 1) + 1:stride, :])
    x_cols = jnp.concatenate(cols, axis=-1)             # (N, Ho, Wo, D)
    x_cols = jnp.pad(x_cols, ((0, 0), (0, Ho_p - Ho), (0, 0), (0, D_p - D)))
    x_cols = x_cols.reshape(N, Ho_p * Wo, D_p)

    # ---- VMEM budget: double-buffered in/out/weight/bias blocks + slack ----
    in_block = R * D_p * 2
    out_block = R * block_c * 2
    w_block = D_p * block_c * 2
    vmem_limit = 2 * (in_block + out_block + w_block + block_c * 4) + (2 << 20)
    vmem_limit = int(min(max(vmem_limit, 8 << 20), int(vmem_cap * 0.75)))

    out_flat = pl.pallas_call(
        _cbm_kernel,
        out_shape=jax.ShapeDtypeStruct((N, Ho_p * Wo, Cout_p), jnp.bfloat16),
        grid_spec=pltpu.PrefetchScalarGridSpec(
            num_scalar_prefetch=0,
            grid=(N, n_c, n_h),
            in_specs=[
                pl.BlockSpec((1, R, D_p), lambda n, c, h: (n, h, 0)),
                pl.BlockSpec((D_p, block_c), lambda n, c, h: (0, c)),
                pl.BlockSpec((1, block_c), lambda n, c, h: (0, c)),
            ],
            out_specs=pl.BlockSpec((1, R, block_c), lambda n, c, h: (n, h, c)),
        ),
        compiler_params=pltpu.CompilerParams(
            dimension_semantics=("parallel", "parallel", "parallel"),
            vmem_limit_bytes=vmem_limit),
    )(x_cols, w_flat, bias_p)

    out = out_flat.reshape(N, Ho_p, Wo, Cout_p)[:, :Ho, :, :Cout]
    return jnp.transpose(out, (0, 3, 1, 2))             # back to NCHW (bf16)


def _reference(x_nchw, weight_oihw, gamma, beta, mean, var, *, stride, eps=1e-5):
    """Pure-JAX f32 reference (conv -> BN(eval) -> Mish)."""
    pad = weight_oihw.shape[-1] // 2
    y = jax.lax.conv_general_dilated(
        x_nchw.astype(jnp.float32), weight_oihw.astype(jnp.float32),
        window_strides=(stride, stride), padding=((pad, pad), (pad, pad)),
        dimension_numbers=("NCHW", "OIHW", "NCHW"),
        precision=jax.lax.Precision.HIGHEST)
    s = gamma / jnp.sqrt(var + eps)
    b = beta - mean * s
    y = y * s[None, :, None, None] + b[None, :, None, None]
    return y * jnp.tanh(jax.nn.softplus(y))


if __name__ == "__main__":
    key = jax.random.PRNGKey(0)
    N, Cin, H, W = 2, 4, 16, 16
    Cout, K, stride = 8, 3, 1

    k1, k2, k3, k4, k5, k6 = jax.random.split(key, 6)
    x = jax.random.normal(k1, (N, Cin, H, W), dtype=jnp.float32)
    weight = jax.random.normal(k2, (Cout, Cin, K, K), dtype=jnp.float32) * 0.1
    gamma = 1.0 + 0.1 * jax.random.normal(k3, (Cout,), dtype=jnp.float32)
    beta = 0.1 * jax.random.normal(k4, (Cout,), dtype=jnp.float32)
    running_mean = 0.1 * jax.random.normal(k5, (Cout,), dtype=jnp.float32)
    running_var = jnp.abs(1.0 + 0.1 * jax.random.normal(k6, (Cout,), dtype=jnp.float32))

    out = cbm_block(x, weight, gamma, beta, running_mean, running_var,
                    stride=stride)
    out = jax.block_until_ready(out)

    ref = _reference(x, weight, gamma, beta, running_mean, running_var,
                     stride=stride)
    assert out.shape == (N, Cout, H, W)
    assert out.dtype == jnp.bfloat16
    # bf16 matmul inputs (f32 accumulation) + bf16 output writeback -> small
    # numeric drift vs the f32 reference.
    assert jnp.max(jnp.abs(out.astype(jnp.float32) - ref)) < 4e-2

    print("KERNEL_OK")
</pallas_src>

<mosaic_0001>
module attributes {stable_mosaic.version = 11 : i64} {
  func.func @_cbm_kernel(%arg0: i32, %arg1: i32, %arg2: i32, %arg3: memref<1x128x80xbf16, #tpu.memory_space<vmem>>, %arg4: memref<80x128xbf16, #tpu.memory_space<vmem>>, %arg5: memref<1x128xf32, #tpu.memory_space<vmem>>, %arg6: memref<1x128x128xbf16, #tpu.memory_space<vmem>>) attributes {dimension_semantics = [#tpu.dimension_semantics<parallel>, #tpu.dimension_semantics<parallel>, #tpu.dimension_semantics<parallel>], iteration_bounds = array<i64: 2, 1, 2>, scalar_prefetch = 0 : i64, scratch_operands = 0 : i64, tpu.core_type = #tpu.core_type<tc>, window_params = [{transform_indices = @transform_0, window_bounds = array<i64: 1, 128, 80>}, {transform_indices = @transform_1, window_bounds = array<i64: 80, 128>}, {transform_indices = @transform_2, window_bounds = array<i64: 1, 128>}, {transform_indices = @transform_3, window_bounds = array<i64: 1, 128, 128>}]} {
    %c0 = arith.constant 0 : index
    %c0_0 = arith.constant 0 : index
    %c0_1 = arith.constant 0 : index
    %0 = vector.load %arg3[%c0, %c0_0, %c0_1] : memref<1x128x80xbf16, #tpu.memory_space<vmem>>, vector<1x128x80xbf16>
    %1 = vector.shape_cast %0 : vector<1x128x80xbf16> to vector<128x80xbf16>
    %c0_2 = arith.constant 0 : index
    %c0_3 = arith.constant 0 : index
    %2 = vector.load %arg4[%c0_2, %c0_3] : memref<80x128xbf16, #tpu.memory_space<vmem>>, vector<80x128xbf16>
    %cst = arith.constant dense<0.000000e+00> : vector<128x128xf32>
    %3 = tpu.matmul %1, %2, %cst {dimension_numbers = #tpu.dot_dimension_numbers<[1], [0], [0], [1], [0, 0, 1, 1], [], []>} : vector<128x80xbf16>, vector<80x128xbf16>, vector<128x128xf32> -> vector<128x128xf32>
    %c0_4 = arith.constant 0 : index
    %c0_5 = arith.constant 0 : index
    %4 = vector.load %arg5[%c0_4, %c0_5] : memref<1x128xf32, #tpu.memory_space<vmem>>, vector<1x128xf32>
    %5 = vector.broadcast %4 : vector<1x128xf32> to vector<128x128xf32>
    %6 = arith.addf %3, %5 : vector<128x128xf32>
    %cst_6 = arith.constant 2.000000e+01 : f32
    %7 = vector.broadcast %cst_6 : f32 to vector<128x128xf32>
    %8 = arith.minimumf %6, %7 : vector<128x128xf32>
    %9 = math.exp %8 : vector<128x128xf32>
    %cst_7 = arith.constant 1.000000e+00 : f32
    %10 = vector.broadcast %cst_7 : f32 to vector<128x128xf32>
    %11 = arith.addf %10, %9 : vector<128x128xf32>
    %cst_8 = arith.constant 1.000000e+00 : f32
    %12 = vector.broadcast %cst_8 : f32 to vector<128x128xf32>
    %13 = arith.addf %12, %9 : vector<128x128xf32>
    %14 = arith.mulf %11, %13 : vector<128x128xf32>
    %cst_9 = arith.constant 1.000000e+00 : f32
    %15 = vector.broadcast %cst_9 : f32 to vector<128x128xf32>
    %16 = arith.addf %14, %15 : vector<128x128xf32>
    %17 = tpu.reciprocal %16 {approx = true} : vector<128x128xf32> -> vector<128x128xf32>
    %18 = arith.mulf %16, %17 : vector<128x128xf32>
    %cst_10 = arith.constant 2.000000e+00 : f32
    %19 = vector.broadcast %cst_10 : f32 to vector<128x128xf32>
    %20 = arith.subf %19, %18 : vector<128x128xf32>
    %21 = arith.mulf %17, %20 : vector<128x128xf32>
    %cst_11 = arith.constant 1.000000e+00 : f32
    %22 = vector.broadcast %cst_11 : f32 to vector<128x128xf32>
    %23 = arith.subf %14, %22 : vector<128x128xf32>
    %24 = arith.mulf %23, %21 : vector<128x128xf32>
    %25 = arith.mulf %6, %24 : vector<128x128xf32>
    %26 = arith.truncf %25 : vector<128x128xf32> to vector<128x128xbf16>
    %c0_12 = arith.constant 0 : index
    %c0_13 = arith.constant 0 : index
    %c0_14 = arith.constant 0 : index
    %27 = vector.load %arg6[%c0_12, %c0_13, %c0_14] : memref<1x128x128xbf16, #tpu.memory_space<vmem>>, vector<1x128x128xbf16>
    %28 = vector.shape_cast %27 : vector<1x128x128xbf16> to vector<128x128xbf16>
    %29 = vector.shape_cast %26 : vector<128x128xbf16> to vector<1x128x128xbf16>
    tpu.vector_store %arg6[%c0_12, %c0_13, %c0_14], %29 {strides = array<i32>} : memref<1x128x128xbf16, #tpu.memory_space<vmem>>, vector<1x128x128xbf16>,
    return
  }
  func.func @transform_0(%arg0: i32, %arg1: i32, %arg2: i32) -> (i32, i32, i32) {
    %c0_i32 = arith.constant 0 : i32
    %c0_i32_0 = arith.constant 0 : i32
    return %arg0, %arg2, %c0_i32 : i32, i32, i32
  }
  func.func @transform_1(%arg0: i32, %arg1: i32, %arg2: i32) -> (i32, i32) {
    %c0_i32 = arith.constant 0 : i32
    %c0_i32_0 = arith.constant 0 : i32
    return %c0_i32, %arg1 : i32, i32
  }
  func.func @transform_2(%arg0: i32, %arg1: i32, %arg2: i32) -> (i32, i32) {
    %c0_i32 = arith.constant 0 : i32
    %c0_i32_0 = arith.constant 0 : i32
    return %c0_i32, %arg1 : i32, i32
  }
  func.func @transform_3(%arg0: i32, %arg1: i32, %arg2: i32) -> (i32, i32, i32) {
    %c0_i32 = arith.constant 0 : i32
    return %arg0, %arg2, %arg1 : i32, i32, i32
  }
}

</mosaic_0001>

<bundles_post_ra>
// kernel: tpu_custom_call.1
= control target key start
LH: loop header
LB: loop body
LE: loop exit
PB: predicated region body
PF: predicated region fallthrough
CT: control target
= control target key end

     0   :  { %8 = vsyncpa [#allocation3], 0  ;;  %s1667_s0 = inlined_call_operand.vmem [shape: bf16[2,256,80], index: 0, kind: input, shape index: {}]   ;;  %s1668_s1 = inlined_call_operand.vmem [shape: bf16[80,128], index: 1, kind: input, shape index: {}]   ;;  %s1669_s2 = inlined_call_operand.vmem [shape: f32[1,128], index: 2, kind: input, shape index: {}]   ;;  %s1670_s3 = inlined_call_operand.hbm [shape: bf16[2,256,128], index: 3, kind: output, shape index: {}]  }
   0x1   :  { %10 = vsyncpa [#allocation3 + $0x1], 0  ;;  %s1336_s12 = smov 0   ;;  %s1338_s13 = smov 0  }
   0x2   :  { %s1340_s14 = smov 0   ;;  %s1342_s15 = smov 0  }
   0x3   :  { %s1344_s16 = smov 0   ;;  %s1346_s17 = smov 0  }
   0x4   :  { %s1348_s18 = smov 0   ;;  %s1350_s19 = smov 0  }
   0x5 LB: > { %s884_s20 = sadd.s32 4294967295, %s1311_s19   ;;  %s885_s21 = sadd.s32 4294967294, %s1311_s19   ;;  %s1311_s19 = sphi %s1350_s19, %s16_s19   ;;  %s1307_s18 = sphi %s1348_s18, %s1679_s18   ;;  %s1303_s17 = sphi %s1346_s17, %s1678_s17   ;;  %s1299_s16 = sphi %s1344_s16, %s1677_s16   ;;  %s1295_s15 = sphi %s1342_s15, %s1676_s15   ;;  %s1291_s14 = sphi %s1340_s14, %s1675_s14   ;;  %s1287_s13 = sphi %s1338_s13, %s1674_s13   ;;  %s1283_s12 = sphi %s1336_s12, %s1673_s12  }
   0x6   : > { %s28_s22 = sadd.s32 1, %s1303_s17  ;;  %s35_s23 = sadd.s32 1, %s1307_s18 }
   0x7   : > { %p29_p0 = scmp.ge.s32.totalorder %s28_s22, 2  ;;  %p136_p1 = scmp.ne.s32.totalorder %s1291_s14, %s1287_s13 }
   0x8   : > { %p137_p2 = scmp.eq.s32.totalorder %s884_s20, 3  ;;  %p142_p5 = scmp.ne.s32.totalorder %s1287_s13, %s1283_s12 }
   0x9   : > { %s1681_s22 = smov (%p29_p0, %s28_s22), 0  ;;  %s1683_s23 = smov (!%p29_p0, %s35_s23), %s1307_s18 }
   0xa   : > { %s120_s24 = ssub.s32 %s1303_s17, %s1681_s22  ;;  %p1387_p3 = por %p137_p2, %p136_p1 }
   0xb   : > { %p37_p4 = scmp.ge.s32.totalorder %s1683_s23, 2  ;;  %p143_p6 = scmp.eq.s32.totalorder %s885_s21, 3 }
   0xc   : > { %p890_p7 = scmp.ge.s32.totalorder %s1311_s19, 1  ;;  %p187_p9 = scmp.lt.s32.totalorder %s1311_s19, 5 }
   0xd   : > { %s1685_s23 = smov (%p37_p4, %s1683_s23), 0  ;;  %p1396_p8 = por %p143_p6, %p142_p5 }
   0xe   : > { %s119_s27 = ssub.s32 %s1307_s18, %s1685_s23  ;;  %s126_s28 = sadd.s32 1, %s1291_s14 }
   0xf   : > { %s121_s29 = sor.u32 %s120_s24, %s119_s27  ;;  %p188_p10 = pnand %p890_p7, %p187_p9 }
  0x10   : > { %p124_p11 = scmp.eq.s32.totalorder %s121_s29, 0  ;;  %v1140_v0 = vld [vmem:[%s1668_s1] sm:$0xff] (!%p188_p10)   ;;  %s1411_s6 = sshll.u32 (!%p188_p10), %s1295_s15, 4  ;;  %v1141_v1 = vld [vmem:[%s1668_s1 + $0x8] sm:$0xff] (!%p188_p10)   ;;  %v1142_v2 = vld [vmem:[%s1668_s1 + $0x10] sm:$0xff] (!%p188_p10)   ;;  %vm344_vm0 = vcmask (!%p188_p10), 654336  }
  0x11   : > { %191 = sbr.rel (%p188_p10) target bundleno = 358 (0x166), region = 32  ;;  %p223_p12 = scmp.lt.s32.totalorder (!%p188_p10), %s1299_s16, 1  ;;  %1031 = vmatprep.subr.bf16.mxu0 (!%p188_p10), %v1140_v0  ;;  %1057 = vmatprep.subr.bf16.mxu1 (!%p188_p10), %v1140_v0  ;;  %v1143_v3 = vld [vmem:[%s1668_s1 + $0x18] sm:$0xff] (!%p188_p10)   ;;  %v1144_v6 = vld [vmem:[%s1668_s1 + $0x20] sm:$0xff] (!%p188_p10)  }
  0x12   : > { %s1405_s30 = scalar_select %p124_p11, %s1291_s14, %s126_s28  }
  0x13   : > { %p225_p13 = scmp.lt.s32.totalorder (!%p188_p10), %s1411_s6, 31  ;;  %1032 = vmatpush3.bf16.msra.mxu0 (!%p188_p10), %v1140_v0  ;;  %1062 = vmatpush3.bf16.msra.mxu1 (!%p188_p10), %v1140_v0  ;;  %v1443_v13 = vld [vmem:[%s1669_s2] ss:$0 sm:$0xff] (!%p188_p10)  ;;  %s219_s11 = sand.u32 (!%p188_p10), 1, %s1287_s13  }
  0x14   : > { %1033 = vmatprep.subr.bf16.mxu0 (!%p188_p10), %v1141_v1  ;;  %1058 = vmatprep.subr.bf16.mxu1 (!%p188_p10), %v1141_v1  ;;  %s1313_s7 = smov (!%p188_p10), [#allocation2]  }
  0x15   : > { %s1221_s8 = sshll.u32 (!%p188_p10), %s1313_s7, 4  ;;  %s1222_s8 = int_to_ptr.vmem [resolvable:$false] %s1221_s8 }
  0x17   : > { %1034 = vmatpush3.bf16.msra.mxu0 (!%p188_p10), %v1141_v1  ;;  %1063 = vmatpush3.bf16.msra.mxu1 (!%p188_p10), %v1141_v1 }
  0x18   : > { %s224_s9 = scalar_select %p223_p12, %s1299_s16, 1  ;;  %1035 = vmatprep.subr.bf16.mxu0 %v1142_v2  ;;  %1059 = vmatprep.subr.bf16.mxu1 %v1142_v2 }
  0x19   : > { %s226_s15 = scalar_select %p225_p13, %s1411_s6, 31 }
  0x1a   : > { %s893_s20 = sshll.u32 %s224_s9, 5  ;;  %s1223_s9 = scalar_lea.vmem %s1222_s8, 2048 }
  0x1b   : > { %s228_s21 = sadd.s32 %s893_s20, %s226_s15  ;;  %1036 = vmatpush3.bf16.msra.mxu0 %v1142_v2  ;;  %1064 = vmatpush3.bf16.msra.mxu1 %v1142_v2  ;;  %s891_s15 = sshll.u32 %s219_s11, 6 }
  0x1c   : > { %s894_s24 = sshll.u32 %s228_s21, 2  ;;  %1037 = vmatprep.subr.bf16.mxu0 %v1143_v3  ;;  %1060 = vmatprep.subr.bf16.mxu1 %v1143_v3  ;;  %s1574_s20 = scalar_lea.vmem [#allocation2], %s891_s15 }
  0x1d   : > { %s230_s5 = scalar_lea.vmem %s1667_s0, %s894_s24  ;;  %s951_s21 = sshll.u32 %s1299_s16, 5 }
  0x1e   : > { %v1145_v4 = vld [vmem:[%s230_s5] sm:$0xff]   ;;  %v1147_v7 = vld [vmem:[%s230_s5 + $0x8] sm:$0xff]   ;;  %v1149_v9 = vld [vmem:[%s230_s5 + $0x10] sm:$0xff]   ;;  %s768_s24 = sadd.s32 %s951_s21, %s1411_s6  ;;  %s771_s28 = sshll.u32 %s1574_s20, 4  ;;  %s1610_s28 = int_to_ptr.vmem [resolvable:$true] %s771_s28 }
  0x1f   : > { %v1146_v5 = vld [vmem:[%s230_s5 + $0x20] sm:$0xff]   ;;  %1041 = vmatprep.mubr.msk.bf16.mxu0 %vm344_vm0, %v1145_v4  ;;  %1038 = vmatpush3.bf16.msra.mxu0 %v1143_v3  ;;  %v1148_v8 = vld [vmem:[%s230_s5 + $0x28] sm:$0xff]   ;;  %v1150_v10 = vld [vmem:[%s230_s5 + $0x30] sm:$0xff]   ;;  %s952_s27 = sshll.u32 %s768_s24, 6  ;;  %s1615_s16 = scalar_lea.sflag [#allocation3], %s219_s11 }
  0x20   : > { %1049 = vmatprep.mubr.msk.bf16.mxu1 %vm344_vm0, %v1146_v5  ;;  %1065 = vmatpush3.bf16.msra.mxu1 %v1143_v3  ;;  %v1151_v11 = vld [vmem:[%s230_s5 + $0x18] sm:$0xff]   ;;  %s1217_s6 = scalar_lea.vmem %s1610_s28, 1024  ;;  %p1224_p4 = scmp.lt.s32.totalorder %s1610_s28, %s1222_s8 }
  0x21   : > { %1039 = vmatprep.subr.bf16.mxu0 %v1144_v6  ;;  %1061 = vmatprep.subr.bf16.mxu1 %v1144_v6  ;;  %v1152_v12 = vld [vmem:[%s230_s5 + $0x38] sm:$0xff]   ;;  %s1608_s5 = scalar_lea.hbm %s1670_s3, %s952_s27  ;;  %p1218_p0 = scmp.ne.s32.totalorder %s1610_s28, %s1217_s6 }
  0x22   : > { %p1225_p5 = scmp.lt.s32.totalorder %s1223_s9, %s1217_s6 }
  0x23   : > { %1040 = vmatpush3.bf16.msra.mxu0 %v1144_v6  ;;  %p1219_p1 = pnand %p1218_p0, %p1387_p3 }
  0x24   : > { %1066 = vmatpush3.bf16.msra.mxu1 %v1144_v6  ;;  %p1226_p6 = por %p1225_p5, %p1224_p4 }
  0x25   : > { %p1220_p2 = pneg %p1219_p1 }
  0x26   : > { %1042 = vmatmul.mubr.msk.bf16.vlgmr.msra.gmra.mrb[0].mxu0 %vm344_vm0, %v1147_v7 }
  0x27   : > { %1050 = vmatmul.mubr.msk.bf16.vlgmr.msra.gmra.mrb[0].mxu1 %vm344_vm0, %v1148_v8  ;;  %1045 = vmatprep.mubr.msk.bf16.mxu0 %vm344_vm0, %v1149_v9  ;;  %p1227_p7 = pnand %p1226_p6, %p1220_p2 }
  0x28   : > { %1053 = vmatprep.mubr.msk.bf16.mxu1 %vm344_vm0, %v1150_v10 }
  0x2e   : > { %1046 = vmatmul.mubr.msk.bf16.gmra.mrb[4].mxu0 %vm344_vm0, %v1151_v11 }
  0x2f   : > { %1054 = vmatmul.mubr.msk.bf16.gmra.mrb[4].mxu1 %vm344_vm0, %v1152_v12 }
  0xf9   : > { %v1043_v14 = vpop.f32.mrb[0].mxu0 }
  0xfa   : > { %v1051_v15 = vpop.f32.mrb[0].mxu1  ;;  %v1446_v16 = vadd.f32 %v1043_v14, %v1443_v13  ;;  %v403_v18 = vpop.f32.mrb[1].mxu0 }
  0xfb   : > { %v1449_v17 = vadd.f32 %v1051_v15, %v1443_v13  ;;  %v435_v19 = vpop.f32.mrb[1].mxu1  ;;  %v1452_v20 = vadd.f32 %v1443_v13, %v403_v18  ;;  %v1044_v22 = vpop.f32.mrb[2].mxu0 }
  0xfc   : > { %v1455_v21 = vadd.f32 %v1443_v13, %v435_v19  ;;  %v1052_v23 = vpop.f32.mrb[2].mxu1  ;;  %v468_v24 = vmin.f32 %v1446_v16, 20.0  ;;  %v1460_v26 = vadd.f32 %v1044_v22, %v1443_v13  ;;  %v406_v28 = vpop.f32.mrb[3].mxu0 }
  0xfd   : > { %v476_v25 = vmin.f32 %v1449_v17, 20.0  ;;  %v1463_v27 = vadd.f32 %v1052_v23, %v1443_v13  ;;  %v438_v29 = vpop.f32.mrb[3].mxu1  ;;  %v466_v30 = vmin.f32 %v1452_v20, 20.0  ;;  %v1468_v32 = vadd.f32 %v1443_v13, %v406_v28 }
  0xfe   : > { %v474_v31 = vmin.f32 %v1455_v21, 20.0  ;;  %v1471_v33 = vadd.f32 %v1443_v13, %v438_v29  ;;  %v486_v34 = vmul.f32 1.442695, %v468_v24  ;;  %v469_v36 = vmin.f32 %v1460_v26, 20.0 }
  0xff   : > { %v502_v35 = vmul.f32 1.442695, %v476_v25  ;;  %v477_v37 = vmin.f32 %v1463_v27, 20.0  ;;  %v482_v38 = vmul.f32 1.442695, %v466_v30  ;;  %v467_v40 = vmin.f32 %v1468_v32, 20.0 }
 0x100   : > { %v498_v39 = vmul.f32 1.442695, %v474_v31  ;;  %v475_v41 = vmin.f32 %v1471_v33, 20.0  ;;  %1153 = vpow2.f32 %v486_v34  ;;  %v488_v42 = vmul.f32 1.442695, %v469_v36 }
 0x101   : > { %1155 = vpow2.f32 %v502_v35  ;;  %v504_v43 = vmul.f32 1.442695, %v477_v37  ;;  %v1047_v44 = vpop.f32.mrb[4].mxu0  ;;  %v484_v46 = vmul.f32 1.442695, %v467_v40 }
 0x102   : > { %v1055_v45 = vpop.f32.mrb[4].mxu1  ;;  %1157 = vpow2.f32 %v482_v38  ;;  %v1478_v47 = vadd.f32 %v1047_v44, %v1443_v13  ;;  %v419_v49 = vpop.f32.mrb[5].mxu0  ;;  %v500_v51 = vmul.f32 1.442695, %v475_v41 }
 0x103   : > { %v1481_v48 = vadd.f32 %v1055_v45, %v1443_v13  ;;  %v451_v50 = vpop.f32.mrb[5].mxu1  ;;  %1159 = vpow2.f32 %v498_v39  ;;  %v1484_v52 = vadd.f32 %v1443_v13, %v419_v49  ;;  %v1048_v53 = vpop.f32.mrb[6].mxu0 }
 0x104   : > { %v1056_v54 = vpop.f32.mrb[6].mxu1  ;;  %1161 = vpow2.f32 %v488_v42  ;;  %v472_v55 = vmin.f32 %v1478_v47, 20.0  ;;  %v1489_v57 = vadd.f32 %v1048_v53, %v1443_v13  ;;  %v422_v58 = vpop.f32.mrb[7].mxu0  ;;  %v1500_v4 = vadd.f32 %v1443_v13, %v451_v50 }
 0x105   : > { %v480_v56 = vmin.f32 %v1481_v48, 20.0  ;;  %v1491_v59 = vpop.f32.mrb[7].mxu1  ;;  %1163 = vpow2.f32 %v504_v43  ;;  %v470_v60 = vmin.f32 %v1484_v52, 20.0  ;;  %v1495_v61 = vadd.f32 %v1056_v54, %v1443_v13 }
 0x106   : > { %1165 = vpow2.f32 %v484_v46  ;;  %v494_v62 = vmul.f32 1.442695, %v472_v55  ;;  %v473_v0 = vmin.f32 %v1489_v57, 20.0  ;;  %v1503_v11 = vadd.f32 %v1443_v13, %v422_v58 }
 0x107   : > { %v510_v63 = vmul.f32 1.442695, %v480_v56  ;;  %1167 = vpow2.f32 %v500_v51  ;;  %v481_v1 = vmin.f32 %v1495_v61, 20.0  ;;  %v490_v2 = vmul.f32 1.442695, %v470_v60 }
 0x108   : > { %1169 = vpow2.f32 %v494_v62  ;;  %v496_v5 = vmul.f32 1.442695, %v473_v0  ;;  %v478_v23 = vmin.f32 %v1500_v4, 20.0  ;;  %v471_v36 = vmin.f32 %v1503_v11, 20.0 }
 0x109   : > { %1171 = vpow2.f32 %v510_v63  ;;  %v512_v8 = vmul.f32 1.442695, %v481_v1  ;;  %v1522_v58 = vadd.f32 %v1443_v13, %v1491_v59 }
 0x10a   : > { %v1154_v3 = vpop.eup %1153  ;;  %1173 = vpow2.f32 %v490_v2  ;;  %v506_v46 = vmul.f32 1.442695, %v478_v23  ;;  %v492_v51 = vmul.f32 1.442695, %v471_v36 }
 0x10b   : > { %v1156_v6 = vpop.eup %1155  ;;  %v516_v7 = vadd.f32 1.0, %v1154_v3  ;;  %1175 = vpow2.f32 %v496_v5 }
 0x10c   : > { %v1158_v9 = vpop.eup %1157  ;;  %v524_v10 = vadd.f32 1.0, %v1156_v6  ;;  %1177 = vpow2.f32 %v512_v8  ;;  %v479_v8 = vmin.f32 %v1522_v58, 20.0 }
 0x10d   : > { %v1160_v12 = vpop.eup %1159  ;;  %v532_v14 = vmul.f32 %v516_v7, %v516_v7  ;;  %v514_v15 = vadd.f32 1.0, %v1158_v9 }
 0x10e   : > { %v1162_v18 = vpop.eup %1161  ;;  %v1505_v19 = vmul.f32 %v524_v10, %v524_v10  ;;  %v522_v22 = vadd.f32 1.0, %v1160_v12 }
 0x10f   : > { %v1164_v24 = vpop.eup %1163  ;;  %v548_v25 = vadd.f32 1.0, %v532_v14  ;;  %v530_v28 = vmul.f32 %v514_v15, %v514_v15  ;;  %v517_v29 = vadd.f32 1.0, %v1162_v18  ;;  %v919_v12 = vadd.f32 -1.0, %v532_v14 }
 0x110   : > { %v1166_v30 = vpop.eup %1165  ;;  %v556_v31 = vadd.f32 1.0, %v1505_v19  ;;  %v538_v34 = vmul.f32 %v522_v22, %v522_v22  ;;  %v525_v35 = vadd.f32 1.0, %v1164_v24  ;;  %v927_v23 = vadd.f32 -1.0, %v1505_v19 }
 0x111   : > { %v1168_v37 = vpop.eup %1167  ;;  %1179 = vrcp.f32 %v548_v25  ;;  %v546_v38 = vadd.f32 1.0, %v530_v28  ;;  %v1510_v39 = vmul.f32 %v517_v29, %v517_v29  ;;  %v515_v45 = vadd.f32 1.0, %v1166_v30 }
 0x112   : > { %v1170_v40 = vpop.eup %1169  ;;  %1181 = vrcp.f32 %v556_v31  ;;  %v554_v41 = vadd.f32 1.0, %v538_v34  ;;  %v1512_v42 = vmul.f32 %v525_v35, %v525_v35  ;;  %v523_v50 = vadd.f32 1.0, %v1168_v37 }
 0x113   : > { %v1172_v43 = vpop.eup %1171  ;;  %1183 = vrcp.f32 %v546_v38  ;;  %v549_v44 = vadd.f32 1.0, %v1510_v39  ;;  %v1516_v53 = vmul.f32 %v515_v45, %v515_v45  ;;  %v520_v54 = vadd.f32 1.0, %v1170_v40 }
 0x114   : > { %1185 = vrcp.f32 %v554_v41  ;;  %v557_v49 = vadd.f32 1.0, %v1512_v42  ;;  %v528_v55 = vadd.f32 1.0, %v1172_v43  ;;  %v1518_v56 = vmul.f32 %v523_v50, %v523_v50  ;;  %v1174_v60 = vpop.eup %1173 }
 0x115   : > { %1187 = vrcp.f32 %v549_v44  ;;  %v547_v62 = vadd.f32 1.0, %v1516_v53  ;;  %v1525_v63 = vmul.f32 %v520_v54, %v520_v54  ;;  %v1176_v1 = vpop.eup %1175  ;;  %v518_v6 = vadd.f32 1.0, %v1174_v60 }
 0x116   : > { %1189 = vrcp.f32 %v557_v49  ;;  %v1527_v0 = vmul.f32 %v528_v55, %v528_v55  ;;  %v555_v2 = vadd.f32 1.0, %v1518_v56  ;;  %v1178_v3 = vpop.eup %1177  ;;  %v521_v7 = vadd.f32 1.0, %v1176_v1 }
 0x117   : > { %1191 = vpow2.f32 %v506_v46  ;;  %v1531_v5 = vadd.f32 1.0, %v1525_v63  ;;  %v529_v15 = vadd.f32 1.0, %v1178_v3  ;;  %v917_v24 = vadd.f32 -1.0, %v530_v28 }
 0x118   : > { %1193 = vpow2.f32 %v492_v51  ;;  %v1534_v13 = vadd.f32 1.0, %v1527_v0  ;;  %v1540_v29 = vmul.f32 %v521_v7, %v521_v7  ;;  %v925_v37 = vadd.f32 -1.0, %v538_v34 }
 0x119   : > { %1195 = vrcp.f32 %v547_v62  ;;  %v1542_v40 = vmul.f32 %v529_v15, %v529_v15  ;;  %v1544_v14 = vmul.f32 %v518_v6, %v518_v6  ;;  %v920_v3 = vadd.f32 -1.0, %v1510_v39 }
 0x11a   : > { %1197 = vrcp.f32 %v555_v2  ;;  %v1547_v46 = vadd.f32 1.0, %v1540_v29  ;;  %v928_v7 = vadd.f32 -1.0, %v1512_v42 }
 0x11b   : > { %v1180_v59 = vpop.eup %1179  ;;  %1199 = vrcp.f32 %v1531_v5  ;;  %v1550_v51 = vadd.f32 1.0, %v1542_v40 }
 0x11c   : > { %v1182_v9 = vpop.eup %1181  ;;  %v580_v10 = vmul.f32 %v1180_v59, %v548_v25  ;;  %1201 = vrcp.f32 %v1534_v13 }
 0x11d   : > { %v1184_v18 = vpop.eup %1183  ;;  %v588_v22 = vmul.f32 %v1182_v9, %v556_v31  ;;  %1203 = vrcp.f32 %v1547_v46 }
 0x11e   : > { %v1186_v30 = vpop.eup %1185  ;;  %v596_v35 = vsub.f32 2.0, %v580_v10  ;;  %v578_v36 = vmul.f32 %v1184_v18, %v546_v38  ;;  %1205 = vrcp.f32 %v1550_v51 }
 0x11f   : > { %v1188_v43 = vpop.eup %1187  ;;  %v604_v45 = vsub.f32 2.0, %v588_v22  ;;  %v586_v25 = vmul.f32 %v1186_v30, %v554_v41 }
 0x120   : > { %v1190_v31 = vpop.eup %1189  ;;  %v612_v50 = vmul.f32 %v1180_v59, %v596_v35  ;;  %v594_v19 = vsub.f32 2.0, %v578_v36  ;;  %v581_v28 = vmul.f32 %v1188_v43, %v549_v44 }
 0x121   : > { %v1192_v38 = vpop.eup %1191  ;;  %v620_v34 = vmul.f32 %v1182_v9, %v604_v45  ;;  %v602_v54 = vsub.f32 2.0, %v586_v25  ;;  %v589_v55 = vmul.f32 %v1190_v31, %v557_v49  ;;  %v918_v9 = vadd.f32 -1.0, %v1516_v53 }
 0x122   : > { %v1194_v41 = vpop.eup %1193  ;;  %v644_v60 = vmul.f32 %v919_v12, %v612_v50  ;;  %v597_v1 = vsub.f32 2.0, %v581_v28  ;;  %v610_v6 = vmul.f32 %v1184_v18, %v594_v19  ;;  %v926_v12 = vadd.f32 -1.0, %v1518_v56 }
 0x123   : > { %v1196_v59 = vpop.eup %1195  ;;  %v605_v44 = vsub.f32 2.0, %v589_v55  ;;  %v652_v49 = vmul.f32 %v927_v23, %v620_v34  ;;  %v618_v36 = vmul.f32 %v1186_v30, %v602_v54  ;;  %v1560_v25 = vadd.f32 1.0, %v1544_v14 }
 0x124   : > { %v1198_v10 = vpop.eup %1197  ;;  %v613_v15 = vmul.f32 %v1188_v43, %v597_v1  ;;  %v579_v22 = vmul.f32 %v1196_v59, %v547_v62  ;;  %v660_v50 = vmul.f32 %v644_v60, %v1446_v16  ;;  %v642_v43 = vmul.f32 %v917_v24, %v610_v6 }
 0x125   : > { %v1200_v35 = vpop.eup %1199  ;;  %v621_v39 = vmul.f32 %v1190_v31, %v605_v44  ;;  %v587_v45 = vmul.f32 %v1198_v10, %v555_v2  ;;  %v668_v30 = vmul.f32 %v652_v49, %v1449_v17  ;;  %v650_v34 = vmul.f32 %v925_v37, %v618_v36 }
 0x126   : > { %v1202_v18 = vpop.eup %1201  ;;  %v645_v42 = vmul.f32 %v920_v3, %v613_v15  ;;  %v595_v53 = vsub.f32 2.0, %v579_v22  ;;  %v584_v23 = vmul.f32 %v1200_v35, %v1531_v5  ;;  %1207 = vrcp.f32 %v1560_v25 }
 0x127   : > { %v653_v62 = vmul.f32 %v928_v7, %v621_v39  ;;  %v603_v19 = vsub.f32 2.0, %v587_v45  ;;  %v592_v56 = vmul.f32 %v1202_v18, %v1534_v13  ;;  %v526_v5 = vadd.f32 1.0, %v1192_v38  ;;  %v1204_v24 = vpop.eup %1203 }
 0x128   : > { %v661_v2 = vmul.f32 %v645_v42, %v1460_v26  ;;  %v611_v31 = vmul.f32 %v1196_v59, %v595_v53  ;;  %v600_v28 = vsub.f32 2.0, %v584_v23  ;;  %v519_v13 = vadd.f32 1.0, %v1194_v41  ;;  %v1206_v26 = vpop.eup %1205 }
 0x129   : > { %v669_v16 = vmul.f32 %v653_v62, %v1463_v27  ;;  %v619_v54 = vmul.f32 %v1198_v10, %v603_v19  ;;  %v608_v55 = vsub.f32 2.0, %v592_v56  ;;  %v508_v17 = vmul.f32 1.442695, %v479_v8 }
 0x12a   : > { %v979_v60 = vpack.c.bf16 %v661_v2, %v660_v50  ;;  %v643_v1 = vmul.f32 %v918_v9, %v611_v31  ;;  %v658_v59 = vmul.f32 %v642_v43, %v1452_v20  ;;  %v616_v37 = vmul.f32 %v1200_v35, %v600_v28 }
 0x12b   : > { %v999_v3 = vpack.c.bf16 %v669_v16, %v668_v30  ;;  %v651_v6 = vmul.f32 %v926_v12, %v619_v54  ;;  %v585_v38 = vmul.f32 %v1204_v24, %v1547_v46  ;;  %v666_v44 = vmul.f32 %v650_v34, %v1455_v21 }
 0x12c   : > { %1011 = vst [vmem:[%s1574_s20 + $0x8] sm:$0xff] %v979_v60   ;;  %v659_v27 = vmul.f32 %v643_v1, %v1468_v32  ;;  %v624_v8 = vmul.f32 %v1202_v18, %v608_v55  ;;  %v593_v20 = vmul.f32 %v1206_v26, %v1550_v51  ;;  %v923_v9 = vadd.f32 -1.0, %v1525_v63 }
 0x12d   : > { %1015 = vst [vmem:[%s1574_s20 + $0x28] sm:$0xff] %v999_v3   ;;  %v667_v41 = vmul.f32 %v651_v6, %v1471_v33  ;;  %v542_v10 = vmul.f32 %v526_v5, %v526_v5  ;;  %v601_v49 = vsub.f32 2.0, %v585_v38  ;;  %v931_v32 = vadd.f32 -1.0, %v1527_v0 }
 0x12e   : > { %v974_v7 = vpack.c.bf16 %v659_v27, %v658_v59  ;;  %v924_v22 = vadd.f32 -1.0, %v1540_v29  ;;  %v609_v46 = vsub.f32 2.0, %v593_v20  ;;  %v648_v21 = vmul.f32 %v923_v9, %v616_v37 }
 0x12f   : > { %v994_v15 = vpack.c.bf16 %v667_v41, %v666_v44  ;;  %v617_v12 = vmul.f32 %v1204_v24, %v601_v49  ;;  %v535_v35 = vmul.f32 %v519_v13, %v519_v13  ;;  %1209 = vpow2.f32 %v508_v17 }
 0x130   : > { %975 = vst [vmem:[%s1574_s20] sm:$0xff] %v974_v7   ;;  %v656_v33 = vmul.f32 %v931_v32, %v624_v8  ;;  %v625_v36 = vmul.f32 %v1206_v26, %v609_v46  ;;  %v932_v51 = vadd.f32 -1.0, %v1542_v40  ;;  %v558_v45 = vadd.f32 1.0, %v542_v10  ;;  %v1208_v0 = vpop.eup %1207 }
 0x131   : > { %1014 = vst [vmem:[%s1574_s20 + $0x20] sm:$0xff] %v994_v15   ;;  %v649_v63 = vmul.f32 %v924_v22, %v617_v12  ;;  %v551_v39 = vadd.f32 1.0, %v535_v35  ;;  %v664_v29 = vmul.f32 %v648_v21, %v1478_v47  ;;  %v582_v43 = vmul.f32 %v1208_v0, %v1560_v25 }
 0x132   : > { %v657_v18 = vmul.f32 %v932_v51, %v625_v36  ;;  %v672_v42 = vmul.f32 %v656_v33, %v1481_v48  ;;  %v921_v48 = vadd.f32 -1.0, %v1544_v14  ;;  %v922_v16 = vadd.f32 -1.0, %v535_v35 }
 0x133   : > { %v665_v50 = vmul.f32 %v649_v63, %v1489_v57  ;;  %1211 = vrcp.f32 %v551_v39  ;;  %v598_v19 = vsub.f32 2.0, %v582_v43  ;;  %v929_v13 = vadd.f32 -1.0, %v542_v10 }
 0x134   : > { %v673_v53 = vmul.f32 %v657_v18, %v1495_v61  ;;  %1213 = vrcp.f32 %v558_v45 }
 0x135   : > { %v989_v23 = vpack.c.bf16 %v665_v50, %v664_v29  ;;  %v614_v47 = vmul.f32 %v1208_v0, %v598_v19 }
 0x136   : > { %v1009_v40 = vpack.c.bf16 %v673_v53, %v672_v42 }
 0x137   : > { %1013 = vst [vmem:[%s1574_s20 + $0x18] sm:$0xff] %v989_v23   ;;  %v646_v25 = vmul.f32 %v921_v48, %v614_v47 }
 0x138   : > { %1017 = vst [vmem:[%s1574_s20 + $0x38] sm:$0xff] %v1009_v40  }
 0x139   : > { %v1210_v62 = vpop.eup %1209  ;;  %v662_v60 = vmul.f32 %v646_v25, %v1484_v52 }
 0x13a   : > { %v527_v56 = vadd.f32 1.0, %v1210_v62 }
 0x13c   : > { %v543_v30 = vmul.f32 %v527_v56, %v527_v56 }
 0x13d   : > { %v1212_v2 = vpop.eup %1211 }
 0x13e   : > { %v583_v31 = vmul.f32 %v1212_v2, %v551_v39  ;;  %v559_v57 = vadd.f32 1.0, %v543_v30  ;;  %v1214_v28 = vpop.eup %1213  ;;  %v930_v27 = vadd.f32 -1.0, %v543_v30 }
 0x13f   : > { %v590_v54 = vmul.f32 %v1214_v28, %v558_v45 }
 0x140   : > { %v599_v61 = vsub.f32 2.0, %v583_v31  ;;  %1215 = vrcp.f32 %v559_v57 }
 0x141   : > { %v606_v5 = vsub.f32 2.0, %v590_v54 }
 0x142   : > { %v615_v34 = vmul.f32 %v1212_v2, %v599_v61 }
 0x143   : > { %v622_v6 = vmul.f32 %v1214_v28, %v606_v5 }
 0x144   : > { %v647_v55 = vmul.f32 %v922_v16, %v615_v34 }
 0x145   : > { %v654_v26 = vmul.f32 %v929_v13, %v622_v6 }
 0x146   : > { %v663_v1 = vmul.f32 %v647_v55, %v1503_v11 }
 0x147   : > { %v670_v11 = vmul.f32 %v654_v26, %v1500_v4 }
 0x148   : > { %v984_v24 = vpack.c.bf16 %v663_v1, %v662_v60 }
 0x14a   : > { %v1216_v3 = vpop.eup %1215  ;;  %1012 = vst [vmem:[%s1574_s20 + $0x10] sm:$0xff] %v984_v24  }
 0x14b   : > { %v591_v14 = vmul.f32 %v1216_v3, %v559_v57 }
 0x14d   : > { %v607_v17 = vsub.f32 2.0, %v591_v14 }
 0x14f   : > { %v623_v59 = vmul.f32 %v1216_v3, %v607_v17 }
 0x151   : > { %v655_v52 = vmul.f32 %v930_v27, %v623_v59 }
 0x153   : > { %v671_v37 = vmul.f32 %v655_v52, %v1522_v58 }
 0x155   : > { %v1004_v38 = vpack.c.bf16 %v671_v37, %v670_v11 }
 0x157   : > { %1016 = vst [vmem:[%s1574_s20 + $0x30] sm:$0xff] %v1004_v38  }
 0x158   : > { %1230 = shalt.err (!%p1227_p7)
}
 0x159   : > { %s1231_s10 = scalar_lea.hbm %s1608_s5, 1024  ;;  %s1235_s20 = scalar_lea.hbm %s1670_s3, 4096 }
 0x15a   : > { %p1232_p9 = scmp.ne.s32.totalorder %s1608_s5, %s1231_s10  ;;  %p1236_p12 = scmp.lt.u32.totalorder %s1608_s5, %s1670_s3 }
 0x15b   : > { %p1237_p13 = scmp.lt.u32.totalorder %s1235_s20, %s1231_s10  ;;  %p1239_p1 = scmp.lt.u32.totalorder %s1231_s10, %s1608_s5 }
 0x15c   : > { %p1233_p10 = pnand %p1232_p9, %p1387_p3 }
 0x15d   : > { %p1238_p0 = por %p1237_p13, %p1236_p12 }
 0x15e   : > { %p1234_p11 = pneg %p1233_p10 }
 0x15f   : > { %p1240_p2 = por %p1239_p1, %p1238_p0 }
 0x161   : > { %p1241_p4 = pnand %p1240_p2, %p1234_p11 }
 0x163   : > { %1244 = shalt.err (!%p1241_p4)
}
 0x164   : > { %s1314_s27 = smov 64   ;;  %s1315_s29 = smov 4  }
 0x165   : > { %1067 = dma.vmem_to_hbm [thread:$0]  (%p1387_p3), %s1610_s28, 1024, %s1608_s5, %s1615_s16, %s1314_s27, %s1314_s27, %s1315_s29  }
 0x166 PF: > { %p1073_p5 = scmp.ge.s32.totalorder %s1311_s19, 2  ;;  %s786_s4 = sand.u32 1, %s1283_s12  }
 0x167   : > { %s787_s6 = scalar_lea.sflag [#allocation3], %s786_s4 }
 0x168   : > { %p1070_p6 = pnand %p1073_p5, %p1396_p8 }
 0x16a   : > { %1278 = dma.done.wait (!%p1070_p6), %s787_s6, 1024  }
 0x16b   : > { %1280 = vsyncadd (!%p1070_p6), %s787_s6, 4294966272  ;;  %s16_s19 = sadd.s32 1, %s1311_s19   ;;  %s1673_s12 = smov %s1287_s13 }
 0x16c   : > { %p13_p7 = scmp.ge.s32.totalorder %s16_s19, 6   ;;  %s1674_s13 = smov %s1291_s14 }
 0x16d   : > { %s1675_s14 = smov %s1405_s30  ;;  %s1676_s15 = smov %s1303_s17 }
 0x16e   : > { %s1677_s16 = smov %s1307_s18  ;;  %s1678_s17 = smov %s1681_s22 }
 0x16f   : > { %s1679_s18 = smov %s1685_s23  ;;  %15 = sbr.rel (!%p13_p7) target bundleno = 5 (0x5), region = 73 }
 0x176   :  { %792 = vsyncpa [#allocation3], 1 }
 0x177   :  { %794 = vsyncpa [#allocation3 + $0x1], 1 }

</bundles_post_ra>
